<compile_context>
chip_gen: v5e
topology: v5e:2x2
jax: 0.10.0
libtpu: 0.0.40
codegen_flags: <defaults>
</compile_context>

<pallas_src>
import jax
import jax.numpy as jnp
from jax.experimental import pallas as pl
from jax.experimental.pallas import tpu as pltpu


def _interp_matrix(out_size: int, in_size: int) -> jnp.ndarray:
    """Row-stochastic matrix A (out_size, in_size) for 1-D bilinear, align_corners=True."""
    i = jnp.arange(out_size, dtype=jnp.float32)
    if out_size > 1:
        src = i * (in_size - 1) / (out_size - 1)
    else:
        src = jnp.zeros_like(i)
    i0 = jnp.clip(jnp.floor(src).astype(jnp.int32), 0, in_size - 1)
    i1 = jnp.minimum(i0 + 1, in_size - 1)
    w1 = src - i0.astype(jnp.float32)
    w0 = 1.0 - w1
    rows = jnp.arange(out_size)
    A = jnp.zeros((out_size, in_size), jnp.float32)
    A = A.at[rows, i0].add(w0)
    A = A.at[rows, i1].add(w1)
    return A


def _make_fuse_kernel(C0, C1, C2, H, W):
    C_tot = C0 + C1 + C2
    HW = H * W

    def fuse_kernel(phase_ref, wmat_ref, scale_ref, bias_ref,
                    current_ref, deep_ref, ah_ref, aw_ref, out_ref):
        # ---- branch 1: 3x3 stride-2 conv as ONE MXU matmul + folded BN + Mish ----
        # phase_ref[0][(py*2+px)*2+ox)*C0 + c, a*W + j] = x_pad[c, 2a+py, 2(j+ox)+px]
        ph = phase_ref[0]                                   # (8*C0, (H+1)*W) bf16
        taps = []
        for ky in range(3):
            py, oy = ky & 1, ky // 2
            for kx in range(3):
                px, ox = kx & 1, kx // 2
                g = (py * 2 + px) * 2 + ox                  # which phase slab
                # contiguous 2-D slice -> tap[c, i*W+j] = x_pad[c, 2i+ky, 2j+kx]
                taps.append(ph[g * C0:(g + 1) * C0, oy * W: oy * W + HW])
        patches = jnp.concatenate(taps, axis=0)             # (9*C0, H*W) bf16
        conv = jnp.dot(wmat_ref[...], patches,
                       preferred_element_type=jnp.float32)  # (C0, H*W) f32 accum
        y = conv * scale_ref[...] + bias_ref[...]           # eval-BatchNorm folded

        # Mish = y * tanh(softplus(y)) = y * t(t+2) / (t(t+2)+2), t = exp(y)
        t = jnp.exp(y)
        num = t * (t + 2.0)
        mish = y * num * pl.reciprocal(num + 2.0, approx=True)
        mish = jnp.where(y > 20.0, y, mish)                 # exp-overflow guard
        out_ref[0, 0:C0] = mish.astype(out_ref.dtype)

        # ---- branch 2: passthrough of the current feature (lane-dense slab copy) ----
        out_ref[0, C0:C0 + C1] = current_ref[0]

        # ---- branch 3: bilinear resize (align_corners=True) as two small matmuls ----
        deep = deep_ref[0]                                  # (C2, h, w) bf16
        v = jax.lax.dot_general(deep, aw_ref[...], (((2,), (1,)), ((), ())),
                                preferred_element_type=jnp.float32)   # (C2, h, W)
        r = jnp.einsum('Hh,chW->cHW', ah_ref[...], v.astype(jnp.bfloat16),
                       preferred_element_type=jnp.float32)            # (C2, H, W)
        out_ref[0, C0 + C1:C_tot] = r.reshape(C2, HW).astype(out_ref.dtype)

    return fuse_kernel


def fuse_forward(shallow, current, deep, conv_w, bn_gamma, bn_beta, bn_mean, bn_var,
                 eps: float = 1e-5):
    """shallow: (N, C0, 2H, 2W)  current: (N, C1, H, W)  deep: (N, C2, h, w)
       -> (N, C0+C1+C2, H, W)"""
    N, C0, Hs, Ws = shallow.shape
    _, C1, H, W = current.shape
    _, C2, h, w = deep.shape
    assert Hs == 2 * H and Ws == 2 * W, "shallow must be exactly 2x the current feature"
    C_tot = C0 + C1 + C2
    HW = H * W

    # ---- glue: stride-2 space-to-depth of the *padded* shallow map (bf16) --------
    # Only a ~1.1x relayout of the (bf16) input, not a 9x im2col in HBM.
    xp = jnp.pad(shallow.astype(jnp.bfloat16), ((0, 0), (0, 0), (1, 1), (1, 1)))
    ph6 = xp.reshape(N, C0, H + 1, 2, W + 1, 2).transpose(0, 3, 5, 1, 2, 4)
    # ph6[n, py, px, c, a, b] = x_pad[n, c, 2a+py, 2b+px]
    slabs = []
    for py in range(2):
        for px in range(2):
            for ox in range(2):
                s = ph6[:, py, px, :, :, ox:ox + W]          # (N, C0, H+1, W)
                slabs.append(s.reshape(N, C0, (H + 1) * W))
    phase = jnp.concatenate(slabs, axis=1)                   # (N, 8*C0, (H+1)*W) bf16

    # conv weight (C0, C0, 3, 3) -> (C0, 9*C0) matching the (ky, kx, c_in) tap order
    wmat = conv_w.transpose(0, 2, 3, 1).reshape(C0, 9 * C0).astype(jnp.bfloat16)

    # fold eval-mode BatchNorm into per-channel scale/bias (kept f32)
    inv_std = 1.0 / jnp.sqrt(bn_var + eps)
    scale = (bn_gamma * inv_std).reshape(C0, 1).astype(jnp.float32)
    bias = (bn_beta - bn_mean * bn_gamma * inv_std).reshape(C0, 1).astype(jnp.float32)

    # bilinear (align_corners=True) interpolation matrices, bf16 MXU operands
    Ah = _interp_matrix(H, h).astype(jnp.bfloat16)           # (H, h)
    Aw = _interp_matrix(W, w).astype(jnp.bfloat16)           # (W, w)

    # lane-dense current feature and bf16 deep feature
    cur = current.reshape(N, C1, HW).astype(jnp.float32)
    deep16 = deep.astype(jnp.bfloat16)

    kernel = _make_fuse_kernel(C0, C1, C2, H, W)

    out_flat = pl.pallas_call(
        kernel,
        out_shape=jax.ShapeDtypeStruct((N, C_tot, HW), jnp.float32),
        grid_spec=pltpu.PrefetchScalarGridSpec(
            num_scalar_prefetch=0,
            grid=(N,),
            in_specs=[
                pl.BlockSpec((1, 8 * C0, (H + 1) * W), lambda i: (i, 0, 0)),
                pl.BlockSpec((C0, 9 * C0), lambda i: (0, 0)),
                pl.BlockSpec((C0, 1), lambda i: (0, 0)),
                pl.BlockSpec((C0, 1), lambda i: (0, 0)),
                pl.BlockSpec((1, C1, HW), lambda i: (i, 0, 0)),
                pl.BlockSpec((1, C2, h, w), lambda i: (i, 0, 0, 0)),
                pl.BlockSpec((H, h), lambda i: (0, 0)),
                pl.BlockSpec((W, w), lambda i: (0, 0)),
            ],
            out_specs=pl.BlockSpec((1, C_tot, HW), lambda i: (i, 0, 0)),
        ),
        compiler_params=pltpu.CompilerParams(
            dimension_semantics=("parallel",),
            vmem_limit_bytes=64 * 1024 * 1024,
        ),
    )(phase, wmat, scale, bias, cur, deep16, Ah, Aw)

    return out_flat.reshape(N, C_tot, H, W)


def _reference(shallow, current, deep, conv_w, gamma, beta, mean, var, eps=1e-5):
    """Pure-JAX f32 reference of the same forward pass (for correctness check)."""
    conv = jax.lax.conv_general_dilated(
        shallow, conv_w, window_strides=(2, 2), padding=((1, 1), (1, 1)),
        dimension_numbers=('NCHW', 'OIHW', 'NCHW'))
    y = (conv - mean.reshape(1, -1, 1, 1)) / jnp.sqrt(var.reshape(1, -1, 1, 1) + eps)
    y = y * gamma.reshape(1, -1, 1, 1) + beta.reshape(1, -1, 1, 1)
    mish = y * jnp.tanh(jax.nn.softplus(y))
    H, W = current.shape[-2:]
    Ah = _interp_matrix(H, deep.shape[-2])
    Aw = _interp_matrix(W, deep.shape[-1])
    interp = jnp.einsum('Hh,nchw,Ww->ncHW', Ah, deep, Aw)
    return jnp.concatenate([mish, current, interp], axis=1)


if __name__ == "__main__":
    key = jax.random.PRNGKey(0)
    k_sh, k_cu, k_de, k_w, k_g, k_b, k_m, k_v = jax.random.split(key, 8)

    N, C0, C1, C2 = 2, 4, 6, 8
    H, W = 8, 8                     # current-feature spatial size
    shallow = jax.random.normal(k_sh, (N, C0, 2 * H, 2 * W), jnp.float32)
    current = jax.random.normal(k_cu, (N, C1, H, W), jnp.float32)
    deep = jax.random.normal(k_de, (N, C2, H // 2, W // 2), jnp.float32)

    # deterministic, synthetic ConvNormAct parameters (Conv2d no-bias + BatchNorm2d eval)
    conv_w = 0.1 * jax.random.normal(k_w, (C0, C0, 3, 3), jnp.float32)
    bn_gamma = 1.0 + 0.1 * jax.random.normal(k_g, (C0,), jnp.float32)
    bn_beta = 0.1 * jax.random.normal(k_b, (C0,), jnp.float32)
    bn_mean = 0.1 * jax.random.normal(k_m, (C0,), jnp.float32)
    bn_var = 1.0 + 0.1 * jnp.abs(jax.random.normal(k_v, (C0,), jnp.float32))

    out = fuse_forward(shallow, current, deep, conv_w, bn_gamma, bn_beta, bn_mean, bn_var)
    out = jax.block_until_ready(out)

    ref = _reference(shallow, current, deep, conv_w, bn_gamma, bn_beta, bn_mean, bn_var)
    assert out.shape == (N, C0 + C1 + C2, H, W), out.shape
    # Tolerance loosened vs. the pure-f32 version because the MXU operands
    # (im2col phases, conv weights, deep feature, interp matrices) are bf16
    # (f32 accumulation); observed error is O(1e-2) worst case.
    assert jnp.allclose(out, ref, atol=5e-2, rtol=5e-2), float(jnp.max(jnp.abs(out - ref)))

    print("KERNEL_OK")
</pallas_src>

<mosaic_0001>
module attributes {stable_mosaic.version = 11 : i64} {
  func.func @fuse_kernel(%arg0: i32, %arg1: memref<1x32x72xbf16, #tpu.memory_space<vmem>>, %arg2: memref<4x36xbf16, #tpu.memory_space<vmem>>, %arg3: memref<4x1xf32, #tpu.memory_space<vmem>>, %arg4: memref<4x1xf32, #tpu.memory_space<vmem>>, %arg5: memref<1x6x64xf32, #tpu.memory_space<vmem>>, %arg6: memref<1x8x4x4xbf16, #tpu.memory_space<vmem>>, %arg7: memref<8x4xbf16, #tpu.memory_space<vmem>>, %arg8: memref<8x4xbf16, #tpu.memory_space<vmem>>, %arg9: memref<1x18x64xf32, #tpu.memory_space<vmem>>) attributes {dimension_semantics = [#tpu.dimension_semantics<parallel>], iteration_bounds = array<i64: 2>, scalar_prefetch = 0 : i64, scratch_operands = 0 : i64, tpu.core_type = #tpu.core_type<tc>, window_params = [{transform_indices = @transform_0, window_bounds = array<i64: 1, 32, 72>}, {pipeline_mode = #tpu.pipeline_mode<synchronous>, transform_indices = @transform_1, window_bounds = array<i64: 4, 36>}, {pipeline_mode = #tpu.pipeline_mode<synchronous>, transform_indices = @transform_2, window_bounds = array<i64: 4, 1>}, {pipeline_mode = #tpu.pipeline_mode<synchronous>, transform_indices = @transform_3, window_bounds = array<i64: 4, 1>}, {transform_indices = @transform_4, window_bounds = array<i64: 1, 6, 64>}, {transform_indices = @transform_5, window_bounds = array<i64: 1, 8, 4, 4>}, {pipeline_mode = #tpu.pipeline_mode<synchronous>, transform_indices = @transform_6, window_bounds = array<i64: 8, 4>}, {pipeline_mode = #tpu.pipeline_mode<synchronous>, transform_indices = @transform_7, window_bounds = array<i64: 8, 4>}, {transform_indices = @transform_8, window_bounds = array<i64: 1, 18, 64>}]} {
    %c0 = arith.constant 0 : index
    %c0_0 = arith.constant 0 : index
    %c0_1 = arith.constant 0 : index
    %0 = vector.load %arg1[%c0, %c0_0, %c0_1] : memref<1x32x72xbf16, #tpu.memory_space<vmem>>, vector<1x32x72xbf16>
    %1 = vector.shape_cast %0 : vector<1x32x72xbf16> to vector<32x72xbf16>
    %2 = vector.extract_strided_slice %1 {offsets = [0, 0], sizes = [4, 64], strides = [1, 1]} : vector<32x72xbf16> to vector<4x64xbf16>
    %3 = vector.extract_strided_slice %1 {offsets = [8, 0], sizes = [4, 64], strides = [1, 1]} : vector<32x72xbf16> to vector<4x64xbf16>
    %4 = vector.extract_strided_slice %1 {offsets = [4, 0], sizes = [4, 64], strides = [1, 1]} : vector<32x72xbf16> to vector<4x64xbf16>
    %5 = vector.extract_strided_slice %1 {offsets = [16, 0], sizes = [4, 64], strides = [1, 1]} : vector<32x72xbf16> to vector<4x64xbf16>
    %6 = vector.extract_strided_slice %1 {offsets = [24, 0], sizes = [4, 64], strides = [1, 1]} : vector<32x72xbf16> to vector<4x64xbf16>
    %7 = vector.extract_strided_slice %1 {offsets = [20, 0], sizes = [4, 64], strides = [1, 1]} : vector<32x72xbf16> to vector<4x64xbf16>
    %8 = vector.extract_strided_slice %1 {offsets = [0, 8], sizes = [4, 64], strides = [1, 1]} : vector<32x72xbf16> to vector<4x64xbf16>
    %9 = vector.extract_strided_slice %1 {offsets = [8, 8], sizes = [4, 64], strides = [1, 1]} : vector<32x72xbf16> to vector<4x64xbf16>
    %10 = vector.extract_strided_slice %1 {offsets = [4, 8], sizes = [4, 64], strides = [1, 1]} : vector<32x72xbf16> to vector<4x64xbf16>
    %11 = tpu.concatenate %2, %3, %4, %5, %6, %7, %8, %9, %10 in 0 : vector<4x64xbf16>, vector<4x64xbf16>, vector<4x64xbf16>, vector<4x64xbf16>, vector<4x64xbf16>, vector<4x64xbf16>, vector<4x64xbf16>, vector<4x64xbf16>, vector<4x64xbf16> -> vector<36x64xbf16>
    %c0_2 = arith.constant 0 : index
    %c0_3 = arith.constant 0 : index
    %12 = vector.load %arg2[%c0_2, %c0_3] : memref<4x36xbf16, #tpu.memory_space<vmem>>, vector<4x36xbf16>
    %cst = arith.constant dense<0.000000e+00> : vector<4x64xf32>
    %13 = tpu.matmul %12, %11, %cst {dimension_numbers = #tpu.dot_dimension_numbers<[1], [0], [0], [1], [0, 0, 1, 1], [], []>} : vector<4x36xbf16>, vector<36x64xbf16>, vector<4x64xf32> -> vector<4x64xf32>
    %c0_4 = arith.constant 0 : index
    %c0_5 = arith.constant 0 : index
    %14 = vector.load %arg3[%c0_4, %c0_5] : memref<4x1xf32, #tpu.memory_space<vmem>>, vector<4x1xf32>
    %15 = vector.broadcast %14 : vector<4x1xf32> to vector<4x64xf32>
    %16 = arith.mulf %13, %15 : vector<4x64xf32>
    %c0_6 = arith.constant 0 : index
    %c0_7 = arith.constant 0 : index
    %17 = vector.load %arg4[%c0_6, %c0_7] : memref<4x1xf32, #tpu.memory_space<vmem>>, vector<4x1xf32>
    %18 = vector.broadcast %17 : vector<4x1xf32> to vector<4x64xf32>
    %19 = arith.addf %16, %18 : vector<4x64xf32>
    %20 = math.exp %19 : vector<4x64xf32>
    %cst_8 = arith.constant 2.000000e+00 : f32
    %21 = vector.broadcast %cst_8 : f32 to vector<4x64xf32>
    %22 = arith.addf %20, %21 : vector<4x64xf32>
    %23 = arith.mulf %20, %22 : vector<4x64xf32>
    %24 = arith.mulf %19, %23 : vector<4x64xf32>
    %cst_9 = arith.constant 2.000000e+00 : f32
    %25 = vector.broadcast %cst_9 : f32 to vector<4x64xf32>
    %26 = arith.addf %23, %25 : vector<4x64xf32>
    %27 = tpu.reciprocal %26 {approx = true} : vector<4x64xf32> -> vector<4x64xf32>
    %28 = arith.mulf %24, %27 : vector<4x64xf32>
    %cst_10 = arith.constant 2.000000e+01 : f32
    %29 = vector.broadcast %cst_10 : f32 to vector<4x64xf32>
    %30 = arith.cmpf ogt, %19, %29 : vector<4x64xf32>
    %31 = arith.select %30, %19, %28 : vector<4x64xi1>, vector<4x64xf32>
    %c0_11 = arith.constant 0 : index
    %c0_12 = arith.constant 0 : index
    %c0_13 = arith.constant 0 : index
    %32 = vector.load %arg9[%c0_11, %c0_12, %c0_13] : memref<1x18x64xf32, #tpu.memory_space<vmem>>, vector<1x4x64xf32>
    %33 = vector.shape_cast %32 : vector<1x4x64xf32> to vector<4x64xf32>
    %34 = vector.shape_cast %31 : vector<4x64xf32> to vector<1x4x64xf32>
    tpu.vector_store %arg9[%c0_11, %c0_12, %c0_13], %34 {strides = array<i32>} : memref<1x18x64xf32, #tpu.memory_space<vmem>>, vector<1x4x64xf32>,
    %c0_14 = arith.constant 0 : index
    %c0_15 = arith.constant 0 : index
    %c0_16 = arith.constant 0 : index
    %35 = vector.load %arg5[%c0_14, %c0_15, %c0_16] : memref<1x6x64xf32, #tpu.memory_space<vmem>>, vector<1x6x64xf32>
    %36 = vector.shape_cast %35 : vector<1x6x64xf32> to vector<6x64xf32>
    %c0_17 = arith.constant 0 : index
    %c4 = arith.constant 4 : index
    %c0_18 = arith.constant 0 : index
    %37 = vector.load %arg9[%c0_17, %c4, %c0_18] : memref<1x18x64xf32, #tpu.memory_space<vmem>>, vector<1x6x64xf32>
    %38 = vector.shape_cast %37 : vector<1x6x64xf32> to vector<6x64xf32>
    %39 = vector.shape_cast %36 : vector<6x64xf32> to vector<1x6x64xf32>
    tpu.vector_store %arg9[%c0_17, %c4, %c0_18], %39 {strides = array<i32>} : memref<1x18x64xf32, #tpu.memory_space<vmem>>, vector<1x6x64xf32>,
    %c0_19 = arith.constant 0 : index
    %c0_20 = arith.constant 0 : index
    %c0_21 = arith.constant 0 : index
    %c0_22 = arith.constant 0 : index
    %40 = vector.load %arg6[%c0_19, %c0_20, %c0_21, %c0_22] : memref<1x8x4x4xbf16, #tpu.memory_space<vmem>>, vector<1x8x4x4xbf16>
    %41 = vector.shape_cast %40 : vector<1x8x4x4xbf16> to vector<8x4x4xbf16>
    %c0_23 = arith.constant 0 : index
    %c0_24 = arith.constant 0 : index
    %42 = vector.load %arg8[%c0_23, %c0_24] : memref<8x4xbf16, #tpu.memory_space<vmem>>, vector<8x4xbf16>
    %cst_25 = arith.constant dense<0.000000e+00> : vector<8x4x8xf32>
    %43 = tpu.matmul %41, %42, %cst_25 {dimension_numbers = #tpu.dot_dimension_numbers<[2], [1], [0, 1], [0], [0, 0, 0, 1, 1, 0], [], []>} : vector<8x4x4xbf16>, vector<8x4xbf16>, vector<8x4x8xf32> -> vector<8x4x8xf32>
    %c0_26 = arith.constant 0 : index
    %c0_27 = arith.constant 0 : index
    %44 = vector.load %arg7[%c0_26, %c0_27] : memref<8x4xbf16, #tpu.memory_space<vmem>>, vector<8x4xbf16>
    %45 = arith.truncf %43 : vector<8x4x8xf32> to vector<8x4x8xbf16>
    "tpu.trace_start"() <{level = 10 : i32, message = "Hh,chW->cHW"}> : () -> ()
    %cst_28 = arith.constant dense<0.000000e+00> : vector<8x8x8xf32>
    %46 = tpu.matmul %45, %44, %cst_28 {dimension_numbers = #tpu.dot_dimension_numbers<[1], [1], [0, 2], [0], [0, 0, 0, 2, 1, 0], [], []>} : vector<8x4x8xbf16>, vector<8x4xbf16>, vector<8x8x8xf32> -> vector<8x8x8xf32>
    %47 = tpu.transpose %46, [0, 2, 1] : vector<8x8x8xf32> -> vector<8x8x8xf32>
    "tpu.trace_stop"() : () -> ()
    %48 = vector.shape_cast %47 : vector<8x8x8xf32> to vector<8x64xf32>
    %c0_29 = arith.constant 0 : index
    %c10 = arith.constant 10 : index
    %c0_30 = arith.constant 0 : index
    %49 = vector.load %arg9[%c0_29, %c10, %c0_30] : memref<1x18x64xf32, #tpu.memory_space<vmem>>, vector<1x8x64xf32>
    %50 = vector.shape_cast %49 : vector<1x8x64xf32> to vector<8x64xf32>
    %51 = vector.shape_cast %48 : vector<8x64xf32> to vector<1x8x64xf32>
    tpu.vector_store %arg9[%c0_29, %c10, %c0_30], %51 {strides = array<i32>} : memref<1x18x64xf32, #tpu.memory_space<vmem>>, vector<1x8x64xf32>,
    return
  }
  func.func @transform_0(%arg0: i32) -> (i32, i32, i32) {
    %c0_i32 = arith.constant 0 : i32
    %c0_i32_0 = arith.constant 0 : i32
    %c0_i32_1 = arith.constant 0 : i32
    return %arg0, %c0_i32, %c0_i32_0 : i32, i32, i32
  }
  func.func @transform_1(%arg0: i32) -> (i32, i32) {
    %c0_i32 = arith.constant 0 : i32
    %c0_i32_0 = arith.constant 0 : i32
    %c0_i32_1 = arith.constant 0 : i32
    return %c0_i32, %c0_i32_0 : i32, i32
  }
  func.func @transform_2(%arg0: i32) -> (i32, i32) {
    %c0_i32 = arith.constant 0 : i32
    %c0_i32_0 = arith.constant 0 : i32
    %c0_i32_1 = arith.constant 0 : i32
    return %c0_i32, %c0_i32_0 : i32, i32
  }
  func.func @transform_3(%arg0: i32) -> (i32, i32) {
    %c0_i32 = arith.constant 0 : i32
    %c0_i32_0 = arith.constant 0 : i32
    %c0_i32_1 = arith.constant 0 : i32
    return %c0_i32, %c0_i32_0 : i32, i32
  }
  func.func @transform_4(%arg0: i32) -> (i32, i32, i32) {
    %c0_i32 = arith.constant 0 : i32
    %c0_i32_0 = arith.constant 0 : i32
    %c0_i32_1 = arith.constant 0 : i32
    return %arg0, %c0_i32, %c0_i32_0 : i32, i32, i32
  }
  func.func @transform_5(%arg0: i32) -> (i32, i32, i32, i32) {
    %c0_i32 = arith.constant 0 : i32
    %c0_i32_0 = arith.constant 0 : i32
    %c0_i32_1 = arith.constant 0 : i32
    %c0_i32_2 = arith.constant 0 : i32
    return %arg0, %c0_i32, %c0_i32_0, %c0_i32_1 : i32, i32, i32, i32
  }
  func.func @transform_6(%arg0: i32) -> (i32, i32) {
    %c0_i32 = arith.constant 0 : i32
    %c0_i32_0 = arith.constant 0 : i32
    %c0_i32_1 = arith.constant 0 : i32
    return %c0_i32, %c0_i32_0 : i32, i32
  }
  func.func @transform_7(%arg0: i32) -> (i32, i32) {
    %c0_i32 = arith.constant 0 : i32
    %c0_i32_0 = arith.constant 0 : i32
    %c0_i32_1 = arith.constant 0 : i32
    return %c0_i32, %c0_i32_0 : i32, i32
  }
  func.func @transform_8(%arg0: i32) -> (i32, i32, i32) {
    %c0_i32 = arith.constant 0 : i32
    %c0_i32_0 = arith.constant 0 : i32
    %c0_i32_1 = arith.constant 0 : i32
    return %arg0, %c0_i32, %c0_i32_0 : i32, i32, i32
  }
}

</mosaic_0001>

<bundles_post_ra>
// kernel: tpu_custom_call.1
= control target key start
LH: loop header
LB: loop body
LE: loop exit
PB: predicated region body
PF: predicated region fallthrough
CT: control target
= control target key end

     0   :  { %s1330_s27 = smov 0   ;;  %s1433_s0 = inlined_call_operand.vmem [shape: bf16[2,32,72], index: 0, kind: input, shape index: {}]   ;;  %s1434_s1 = inlined_call_operand.vmem [shape: bf16[4,36], index: 1, kind: input, shape index: {}]   ;;  %s1435_s2 = inlined_call_operand.vmem [shape: f32[4,1], index: 2, kind: input, shape index: {}]   ;;  %s1436_s3 = inlined_call_operand.vmem [shape: f32[4,1], index: 3, kind: input, shape index: {}]   ;;  %s1437_s4 = inlined_call_operand.vmem [shape: f32[2,6,64], index: 4, kind: input, shape index: {}]   ;;  %s1438_s5 = inlined_call_operand.vmem [shape: bf16[2,8,4,4], index: 5, kind: input, shape index: {}]   ;;  %s1439_s6 = inlined_call_operand.vmem [shape: bf16[8,4], index: 6, kind: input, shape index: {}]   ;;  %s1440_s7 = inlined_call_operand.vmem [shape: bf16[8,4], index: 7, kind: input, shape index: {}]   ;;  %s1441_s8 = inlined_call_operand.vmem [shape: f32[2,18,64], index: 8, kind: output, shape index: {}]  }
   0x1 LB: > { %s1203_s28 = sadd.s32 4294967295, %s1272_s27   ;;  %p1207_p0 = scmp.ge.s32.totalorder %s1272_s27, 1  ;;  %s1272_s27 = sphi %s1330_s27, %s18_s27  }
   0x2   : > { %p281_p1 = scmp.lt.s32.totalorder %s1272_s27, 3 }
   0x4   : > { %p282_p2 = pnand %p1207_p0, %p281_p1 }
   0x5   : > { %p324_p3 = scmp.lt.s32.totalorder (!%p282_p2), %s1203_s28, 1  ;;  %s1274_s16 = smov (!%p282_p2), 120  }
   0x6   : > { %285 = sbr.rel (%p282_p2) target bundleno = 829 (0x33d), region = 52  ;;  %s1279_s10 = smov (!%p282_p2), 24  }
   0x7   : > { %s1280_s11 = smov (!%p282_p2), 8   ;;  %s1282_s13 = smov (!%p282_p2), 56  }
   0x8   : > { %s1283_s14 = smov (!%p282_p2), 32  }
   0xb   : > { %v445_v0 = vld [vmem:[%s1440_s7] sm:$0xf]  ;;  %vm471_vm0 = vcmask 31744   ;;  %s1443_s28 = smov (!%p324_p3, %s1203_s28), 1  ;;  %vm368_vm1 = vcmask 1041408   ;;  %v1275_v50 = vmov 0  }
   0xc   : > { %v477_v1 = vsel %vm471_vm0, %v445_v0, 0  ;;  %s1223_s9 = sshll.u32 %s1443_s28, 4  ;;  %v510_v36 = vld [vmem:[%s1439_s6] sm:$0xf]  ;;  %1260 = vset.pattern.permute.xlu2 %v1275_v50  ;;  %vm372_vm2 = vcmask 1043456   ;;  %vm375_vm3 = vcmask 1045504  }
   0xd   : > { %486 = vmatpush.bf16.xpose.msra.mxu1 %v477_v1  ;;  %s337_s12 = scalar_lea.vmem %s1438_s5, %s1223_s9  ;;  %s1353_s15 = scalar_lea.vmem %s1433_s0, %s1223_s9  ;;  %v680_v37 = vsel %vm471_vm0, %v510_v36, 0  ;;  %v408_v46 = vld [vmem:[%s1435_s2] sm:$0xf]  ;;  %vm388_vm4 = vcmask 293888   ;;  %vm432_vm6 = vcmask 519168   ;;  %vm968_vm7 = vcmask 1047556  }
   0xe   : > { %v437_v2 = vld [vmem:[%s337_s12] sm:$0x3]  ;;  %v438_v3 = vld [vmem:[%s337_s12 + $0x2] sm:$0x3]  ;;  %v439_v4 = vld [vmem:[%s337_s12 + $0x4] sm:$0x3]  ;;  %689 = vmatpush.bf16.xpose.msra.mxu2 %v680_v37  ;;  %1225 = vmatpush.bf16.xpose.msra.mxu3 %v680_v37 }
   0xf   : > { %v440_v5 = vld [vmem:[%s337_s12 + $0x6] sm:$0x3]  ;;  %447 = vst [vmem:[#allocation1] ss:$4 sm:$0xff] %v437_v2  ;;  %v441_v6 = vld [vmem:[%s337_s12 + $0x8] sm:$0x3] }
  0x10   : > { %450 = vst [vmem:[#allocation1 + $0x1] ss:$4 sm:$0xff] %v438_v3  ;;  %v442_v7 = vld [vmem:[%s337_s12 + $0xa] sm:$0x3]  ;;  %v443_v8 = vld [vmem:[%s337_s12 + $0xc] sm:$0x3] }
  0x11   : > { %453 = vst [vmem:[#allocation1 + $0x2] ss:$4 sm:$0xff] %v439_v4  ;;  %v444_v9 = vld [vmem:[%s337_s12 + $0xe] sm:$0x3]  ;;  %v1356_v12 = vld [vmem:[%s1353_s15] sm:$0xf] }
  0x12   : > { %456 = vst [vmem:[#allocation1 + $0x3] ss:$4 sm:$0xff] %v440_v5  ;;  %v353_v13 = vunpack.c.l.b16 %v1356_v12  ;;  %v345_v20 = vld [vmem:[%s1353_s15 + $0x4] sm:$0xf]  ;;  %v415_v47 = vld [vmem:[%s1436_s3] sm:$0xf] }
  0x13   : > { %459 = vst [vmem:[#allocation1 + $0x20] ss:$4 sm:$0xff] %v441_v6  ;;  %v349_v22 = vunpack.c.l.b16 %v345_v20  ;;  %v346_v51 = vld [vmem:[%s1353_s15 + $0x8] sm:$0xf]  ;;  %v347_v53 = vld [vmem:[%s1353_s15 + $0xc] sm:$0xf] }
  0x14   : > { %462 = vst [vmem:[#allocation1 + $0x21] ss:$4 sm:$0xff] %v442_v7  ;;  %v1359_v15 = vpack.c.b16 %v353_v13, %v353_v13  ;;  %v357_v52 = vunpack.c.l.b16 %v346_v51  ;;  %v381_v59 = vsel %vm368_vm1, %v347_v53, %v346_v51  ;;  %s1226_s25 = smul.u32 24, %s1443_s28  ;;  %s1278_s9 = smov 40   ;;  %vm435_vm8 = vcmask 521216  }
  0x15   : > { %465 = vst [vmem:[#allocation1 + $0x22] ss:$4 sm:$0xff] %v443_v8  ;;  %v350_v26 = vpack.c.b16 %v349_v22, %v349_v22  ;;  %s1281_s12 = smov 16   ;;  %s1284_s15 = smov 48   ;;  %vm1108_vm9 = vcmask 64512   ;;  %vm1110_vm10 = vcmask 130048  }
  0x16   : > { %468 = vst [vmem:[#allocation1 + $0x23] ss:$4 sm:$0xff] %v444_v9  ;;  %v365_v17 = vrot.slane %v1359_v15, 2  ;;  %v358_v60 = vpack.c.b16 %v357_v52, %v357_v52  ;;  %v355_v63 = vrot.slane %v1359_v15, 6  ;;  %s1396_s30 = scalar_lea.vmem %s1441_s8, %s1226_s25  ;;  %vm1112_vm11 = vcmask 195584  }
  0x17   : > { %v362_v28 = vrot.slane %v350_v26, 2  ;;  %v351_v55 = vrot.slane %v350_v26, 6  ;;  %vm1114_vm12 = vcmask 261120   ;;  %vm1116_vm13 = vcmask 326656  }
  0x18   : > { %366 = vrot.lane.b32.xlu2 %v365_v17, %s1274_s16  ;;  %v359_v5 = vrot.slane %v358_v60, 2  ;;  %vm1118_vm14 = vcmask 392192   ;;  %vm1120_vm15 = vcmask 457728  }
  0x19   : > { %v469_v10 = vld.sshfl [vmem:[#allocation1] sm:$0xff pattern:$0x73625140]  ;;  %v371_v1 = vsel %vm368_vm1, %v1356_v12, %v351_v55 }
  0x1a   : > { %1215 = vmatmul.msk.bf16.vlgmr.msra.gmra.mxu1 %vm471_vm0, %v469_v10  ;;  %v374_v7 = vsel %vm372_vm2, %v371_v1, %v355_v63  ;;  %v387_v10 = vld [vmem:[%s1434_s1] sm:$0x3]  ;;  %v1277_v63 = vmov 1934713408  }
  0x1b   : > { %v377_v9 = vsel %vm375_vm3, %v374_v7, %v359_v5 }
  0x1d   : > { %v470_v11 = vld.sshfl [vmem:[#allocation1 + $0x20] sm:$0xff pattern:$0x73625140] }
  0x20   : > { %360 = vrot.lane.b32.xlu2 %v1359_v15, %s1274_s16 }
  0x28   : > { %363 = vrot.lane.b32.xlu2 %v362_v28, %s1274_s16  ;;  %s1210_s16 = sshll.u32 %s1443_s28, 3 }
  0x29   : > { %s332_s19 = scalar_lea.vmem %s1437_s4, %s1210_s16 }
  0x2a   : > { %1216 = vmatmul.msk.bf16.gmra.mxu1 %vm471_vm0, %v470_v11 }
  0x30   : > { %418 = vperm.xlu2 %1260, %v415_v47  }
  0x72   : > { %v367_v44 = vpop.permute.xlu2 %366 }
  0x73   : > { %v393_v45 = vsel %vm368_vm1, %v367_v44, 0  ;;  %v1276_v44 = vmov 1983009808  }
  0x74   : > { %400 = vmatpush.bf16.msra.mxu0 %v393_v45  ;;  %v973_v45 = vunpack.c.l.s4 %v1276_v44 }
  0x7a   : > { %v361_v54 = vpop.permute.xlu2 %360 }
  0x7b   : > { %v383_v4 = vsel %vm372_vm2, %v381_v59, %v361_v54 }
  0x82   : > { %v364_v6 = vpop.permute.xlu2 %363 }
  0x83   : > { %v385_v8 = vsel %vm375_vm3, %v383_v4, %v364_v6 }
  0x84   : > { %401 = vmatpush.bf16.msra.mxu0 %v385_v8 }
  0x88   : > { %402 = vmatpush.bf16.msra.mxu0 %v377_v9 }
  0x8b   : > { %1214 = vmatmul.msk.bf16.vlgmr.msra.gmra.mxu0 %vm388_vm4, %v387_v10 }
  0x97   : > { %v488_v14 = vpop.f32.mrf.mxu1 }
  0x98   : > { %v502_v16 = vrot.slane %v488_v14, 4  ;;  %v511_v18 = vpack.c.bf16 %v488_v14, %v488_v14 }
  0x9a   : > { %v512_v19 = vpack.c.bf16 %v502_v16, %v502_v16 }
  0x9c   : > { %1247 = vxpose.binary.xlu0.c.b16.start.end [1/2] (short) (narrow) %v512_v19, %v511_v18, 16 }
  0x9f   : > { %v490_v21 = vpop.f32.mrf.mxu1 }
  0xa0   : > { %v503_v23 = vrot.slane %v490_v21, 4  ;;  %v513_v24 = vpack.c.bf16 %v490_v21, %v490_v21  ;;  %v419_v21 = vpop.permute.xlu2 %418 }
  0xa2   : > { %v514_v25 = vpack.c.bf16 %v503_v23, %v503_v23 }
  0xa4   : > { %1253 = vxpose.binary.xlu1.c.b16.start.end [1/2] (short) (narrow) %v514_v25, %v513_v24, 16 }
  0xa7   : > { %v493_v27 = vpop.f32.mrf.mxu1 }
  0xa8   : > { %v504_v29 = vrot.slane %v493_v27, 4  ;;  %v515_v30 = vpack.c.bf16 %v493_v27, %v493_v27 }
  0xaa   : > { %v516_v31 = vpack.c.bf16 %v504_v29, %v504_v29 }
  0xac   : > { %1250 = vxpose.binary.xlu0.c.b16.start.end [1/2] (short) (narrow) %v516_v31, %v515_v30, 16 }
  0xaf   : > { %v495_v32 = vpop.f32.mrf.mxu1 }
  0xb0   : > { %v505_v33 = vrot.slane %v495_v32, 4  ;;  %v517_v34 = vpack.c.bf16 %v495_v32, %v495_v32 }
  0xb2   : > { %v518_v35 = vpack.c.bf16 %v505_v33, %v505_v33 }
  0xb4   : > { %1256 = vxpose.binary.xlu1.c.b16.start.end [1/2] (short) (narrow) %v518_v35, %v517_v34, 16 }
 0x107   : > { %1259 = vset.pattern.permute.xlu1 %v1275_v50 }
 0x108   : > { %v404_v20 = vpop.f32.mrf.mxu0 }
 0x10e   : > { %411 = vperm.xlu1 %1259, %v408_v46  }
 0x110   : > { %v406_v26 = vpop.f32.mrf.mxu0 }
 0x148   : > { %v1248_v38 = vpop.trf.xlu0 }
 0x149   : > { %v655_v41 = vunpack.c.l.b16 %v1248_v38 }
 0x150   : > { %v1249_v39 = vpop.trf.xlu0  ;;  %v1254_v40 = vpop.trf.xlu1 }
 0x151   : > { %v656_v42 = vunpack.c.l.b16 %v1249_v39  ;;  %v657_v56 = vunpack.c.l.b16 %v1254_v40 }
 0x153   : > { %v663_v43 = vpack.c.b16 %v656_v42, %v655_v41 }
 0x155   : > { %1217 = vmatmul.msk.bf16.vlgmr.msra.gmra.mxu2 %vm471_vm0, %v663_v43 }
 0x158   : > { %v1255_v48 = vpop.trf.xlu1  ;;  %v1251_v49 = vpop.trf.xlu0 }
 0x159   : > { %v658_v57 = vunpack.c.l.b16 %v1255_v48  ;;  %v659_v61 = vunpack.c.l.b16 %v1251_v49  ;;  %v974_v49 = vunpack.c.0.s8 %v973_v45 }
 0x15b   : > { %v664_v2 = vpack.c.b16 %v658_v57, %v657_v56 }
 0x160   : > { %v1252_v58 = vpop.trf.xlu0  ;;  %v1257_v0 = vpop.trf.xlu1 }
 0x161   : > { %v660_v62 = vunpack.c.l.b16 %v1252_v58  ;;  %v661_v12 = vunpack.c.l.b16 %v1257_v0  ;;  %v1021_v0 = vunpack.c.l.s4 %v1277_v63 }
 0x163   : > { %v665_v3 = vpack.c.b16 %v660_v62, %v659_v61 }
 0x165   : > { %1218 = vmatmul.msk.bf16.gmra.mxu2 %vm471_vm0, %v664_v2  ;;  %1219 = vmatmul.msk.bf16.vlgmr.msra.gmra.mxu3 %vm471_vm0, %v665_v3 }
 0x168   : > { %v1258_v11 = vpop.trf.xlu1 }
 0x169   : > { %v662_v13 = vunpack.c.l.b16 %v1258_v11 }
 0x16b   : > { %v666_v14 = vpack.c.b16 %v662_v13, %v661_v12  ;;  %v1022_v12 = vunpack.c.0.s8 %v1021_v0 }
 0x175   : > { %1220 = vmatmul.msk.bf16.gmra.mxu3 %vm471_vm0, %v666_v14  ;;  %vm1122_vm0 = vcmask 523264  }
 0x180   : > { %v412_v19 = vpop.permute.xlu1 %411 }
 0x181   : > { %v414_v22 = vmul.f32 %v412_v19, %v404_v20 }
 0x183   : > { %v421_v23 = vadd.f32 %v419_v21, %v414_v22 }
 0x185   : > { %v422_v25 = vmul.f32 1.442695, %v421_v23  ;;  %vm430_vm5 = vcmp.gt.f32.partialorder %v421_v23, 20.0 }
 0x187   : > { %1262 = vpow2.f32 %v422_v25 }
 0x18d   : > { %v1263_v27 = vpop.eup %1262 }
 0x18e   : > { %v424_v30 = vadd.f32 2.0, %v1263_v27 }
 0x190   : > { %v425_v31 = vmul.f32 %v1263_v27, %v424_v30 }
 0x192   : > { %v427_v33 = vadd.f32 2.0, %v425_v31  ;;  %v426_v34 = vmul.f32 %v425_v31, %v421_v23 }
 0x194   : > { %1264 = vrcp.f32 %v427_v33 }
 0x19a   : > { %v1265_v35 = vpop.eup %1264 }
 0x19b   : > { %v429_v36 = vmul.f32 %v1265_v35, %v426_v34 }
 0x19d   : > { %v431_v37 = vsel %vm430_vm5, %v421_v23, %v429_v36 }
 0x19e   : > { %433 = vst.msk [vmem:[%s1396_s30] sm:$0xf] %vm432_vm6, %v431_v37 }
 0x1d8   : > { %v691_v15 = vpop.f32.mrf.mxu2 }
 0x1d9   : > { %711 = vxpose.xlu0.b32.start.end [1/1] (short) (narrow) %v691_v15, 8 }
 0x1e0   : > { %v693_v16 = vpop.f32.mrf.mxu2 }
 0x1e1   : > { %743 = vxpose.xlu2.b32.start.end [1/1] (short) (narrow) %v693_v16, 8 }
 0x1e8   : > { %v696_v17 = vpop.f32.mrf.mxu2  ;;  %v701_v18 = vpop.f32.mrf.mxu3 }
 0x1e9   : > { %775 = vxpose.xlu0.b32.start.end [1/1] (short) (narrow) %v696_v17, 8 }
 0x1f0   : > { %v703_v24 = vpop.f32.mrf.mxu3  ;;  %v698_v28 = vpop.f32.mrf.mxu2 }
 0x1f1   : > { %839 = vxpose.xlu0.b32.start.end [1/1] (short) (narrow) %v701_v18, 8  ;;  %871 = vxpose.xlu1.b32.start.end [1/1] (short) (narrow) %v703_v24, 8 }
 0x1f8   : > { %v706_v29 = vpop.f32.mrf.mxu3 }
 0x1f9   : > { %807 = vxpose.xlu0.b32.start.end [1/1] (short) (narrow) %v698_v28, 8  ;;  %903 = vxpose.xlu1.b32.start.end [1/1] (short) (narrow) %v706_v29, 8 }
 0x200   : > { %v708_v32 = vpop.f32.mrf.mxu3 }
 0x201   : > { %935 = vxpose.xlu1.b32.start.end [1/1] (short) (narrow) %v708_v32, 8 }
 0x260   : > { %1261 = vset.pattern.permute.xlu0 %v1275_v50 }
 0x27a   : > { %v759_v42 = vpop.trf.xlu2 }
 0x27b   : > { %v982_v46 = vrot.slane %v759_v42, 4 }
 0x27d   : > { %v727_v38 = vpop.trf.xlu0 }
 0x27e   : > { %v970_v47 = vrot.slane %v727_v38, 4 }
 0x28d   : > { %v791_v39 = vpop.trf.xlu0 }
 0x28e   : > { %v967_v43 = vrot.slane %v791_v39, 4  ;;  %v971_v57 = vsel %vm968_vm7, %v791_v39, %v970_v47 }
 0x28f   : > { %v979_v1 = vperm.slane %v971_v57, %v974_v49 }
 0x290   : > { %v969_v48 = vsel %vm968_vm7, %v967_v43, %v727_v38 }
 0x291   : > { %v975_v55 = vperm.slane %v969_v48, %v974_v49  ;;  %v1030_v30 = vrot.slane %v979_v1, 4 }
 0x293   : > { %v1018_v2 = vrot.slane %v975_v55, 4 }
 0x295   : > { %v855_v40 = vpop.trf.xlu0  ;;  %v887_v41 = vpop.trf.xlu1 }
 0x296   : > { %v994_v61 = vrot.slane %v855_v40, 4  ;;  %v1006_v4 = vrot.slane %v887_v41, 4 }
 0x29d   : > { %v823_v51 = vpop.trf.xlu0  ;;  %v919_v52 = vpop.trf.xlu1 }
 0x29e   : > { %v980_v53 = vrot.slane %v823_v51, 4  ;;  %v983_v54 = vsel %vm968_vm7, %v823_v51, %v982_v46  ;;  %v992_v50 = vrot.slane %v919_v52, 4  ;;  %v995_v9 = vsel %vm968_vm7, %v919_v52, %v994_v61 }
 0x29f   : > { %v991_v56 = vperm.slane %v983_v54, %v974_v49  ;;  %v1003_v18 = vperm.slane %v995_v9, %v974_v49 }
 0x2a0   : > { %v981_v58 = vsel %vm968_vm7, %v980_v53, %v759_v42  ;;  %v993_v62 = vsel %vm968_vm7, %v992_v50, %v855_v40  ;;  %v434_v53 = vld [vmem:[%s332_s19] sm:$0x3f] }
 0x2a1   : > { %v987_v59 = vperm.slane %v981_v58, %v974_v49  ;;  %v1028_v60 = vrot.slane %v991_v56, 4  ;;  %v999_v5 = vperm.slane %v993_v62, %v974_v49  ;;  %v1031_v36 = vsel %vm968_vm7, %v991_v56, %v1030_v30  ;;  %436 = vst.msk [vmem:[%s1396_s30 + $0x4] sm:$0x3f] %vm435_vm8, %v434_v53 }
 0x2a2   : > { %v1054_v37 = vrot.slane %v1003_v18, 4  ;;  %v1039_v42 = vperm.slane %v1031_v36, %v1022_v12 }
 0x2a3   : > { %v1016_v3 = vrot.slane %v987_v59, 4  ;;  %v1029_v7 = vsel %vm968_vm7, %v1028_v60, %v979_v1  ;;  %v1019_v8 = vsel %vm968_vm7, %v987_v59, %v1018_v2  ;;  %v1042_v19 = vrot.slane %v999_v5, 4 }
 0x2a4   : > { %v1035_v16 = vperm.slane %v1029_v7, %v1022_v12  ;;  %v1027_v17 = vperm.slane %v1019_v8, %v1022_v12  ;;  %v1078_v46 = vrot.slane %v1039_v42, 4 }
 0x2a5   : > { %v951_v6 = vpop.trf.xlu1  ;;  %v1017_v14 = vsel %vm968_vm7, %v1016_v3, %v975_v55 }
 0x2a6   : > { %v1004_v10 = vrot.slane %v951_v6, 4  ;;  %v1007_v11 = vsel %vm968_vm7, %v951_v6, %v1006_v4  ;;  %v1023_v22 = vperm.slane %v1017_v14, %v1022_v12  ;;  %v1074_v27 = vrot.slane %v1035_v16, 4 }
 0x2a7   : > { %v1015_v13 = vperm.slane %v1007_v11, %v974_v49  ;;  %v1070_v29 = vrot.slane %v1027_v17, 4 }
 0x2a8   : > { %v1005_v15 = vsel %vm968_vm7, %v1004_v10, %v887_v41  ;;  %v1066_v35 = vrot.slane %v1023_v22, 4 }
 0x2a9   : > { %v1011_v20 = vperm.slane %v1005_v15, %v974_v49  ;;  %v1052_v21 = vrot.slane %v1015_v13, 4  ;;  %v1055_v40 = vsel %vm968_vm7, %v1015_v13, %v1054_v37 }
 0x2aa   : > { %v1063_v44 = vperm.slane %v1055_v40, %v1022_v12 }
 0x2ab   : > { %v1040_v23 = vrot.slane %v1011_v20, 4  ;;  %v1053_v24 = vsel %vm968_vm7, %v1052_v21, %v1003_v18  ;;  %v1043_v25 = vsel %vm968_vm7, %v1011_v20, %v1042_v19 }
 0x2ac   : > { %v1059_v26 = vperm.slane %v1053_v24, %v1022_v12  ;;  %v1051_v28 = vperm.slane %v1043_v25, %v1022_v12  ;;  %v1079_v47 = vsel %vm968_vm7, %v1063_v44, %v1078_v46  ;;  %v1076_v51 = vrot.slane %v1063_v44, 4 }
 0x2ad   : > { %v1041_v31 = vsel %vm968_vm7, %v1040_v23, %v999_v5 }
 0x2ae   : > { %v1075_v32 = vsel %vm968_vm7, %v1059_v26, %v1074_v27  ;;  %v1071_v33 = vsel %vm968_vm7, %v1051_v28, %v1070_v29  ;;  %v1047_v34 = vperm.slane %v1041_v31, %v1022_v12  ;;  %v1068_v41 = vrot.slane %v1051_v28, 4 }
 0x2af   : > { %1097 = vrot.lane.b32.xlu2 %v1075_v32, %s1278_s9  ;;  %1089 = vrot.lane.b32.xlu1 %v1071_v33, %s1279_s10  ;;  %v1072_v48 = vrot.slane %v1059_v26, 4  ;;  %v1077_v52 = vsel %vm968_vm7, %v1076_v51, %v1039_v42 }
 0x2b0   : > { %v1064_v38 = vrot.slane %v1047_v34, 4  ;;  %v1067_v39 = vsel %vm968_vm7, %v1047_v34, %v1066_v35  ;;  %v1069_v45 = vsel %vm968_vm7, %v1068_v41, %v1027_v17 }
 0x2b1   : > { %1081 = vrot.lane.b32.xlu0 %v1067_v39, %s1280_s11  ;;  %v1073_v49 = vsel %vm968_vm7, %v1072_v48, %v1035_v16 }
 0x2b2   : > { %v1065_v43 = vsel %vm968_vm7, %v1064_v38, %v1023_v22 }
 0x2b7   : > { %1085 = vrot.lane.b32.xlu1 %v1069_v45, %s1281_s12 }
 0x2b9   : > { %1105 = vrot.lane.b32.xlu0 %v1079_v47, %s1282_s13 }
 0x2bf   : > { %1093 = vrot.lane.b32.xlu1 %v1073_v49, %s1283_s14 }
 0x2c7   : > { %1101 = vrot.lane.b32.xlu1 %v1077_v52, %s1284_s15 }
 0x309   : > { %v1098_v61 = vpop.permute.xlu2 %1097 }
 0x321   : > { %v1090_v54 = vpop.permute.xlu1 %1089 }
 0x323   : > { %v1082_v55 = vpop.permute.xlu0 %1081 }
 0x324   : > { %v1109_v56 = vsel %vm1108_vm9, %v1065_v43, %v1082_v55 }
 0x329   : > { %v1086_v50 = vpop.permute.xlu1 %1085 }
 0x32a   : > { %v1111_v58 = vsel %vm1110_vm10, %v1109_v56, %v1086_v50 }
 0x32b   : > { %v1113_v59 = vsel %vm1112_vm11, %v1111_v58, %v1090_v54  ;;  %v1106_v0 = vpop.permute.xlu0 %1105 }
 0x331   : > { %v1094_v57 = vpop.permute.xlu1 %1093 }
 0x332   : > { %v1115_v60 = vsel %vm1114_vm12, %v1113_v59, %v1094_v57 }
 0x333   : > { %v1117_v63 = vsel %vm1116_vm13, %v1115_v60, %v1098_v61 }
 0x339   : > { %v1102_v62 = vpop.permute.xlu1 %1101 }
 0x33a   : > { %v1119_v1 = vsel %vm1118_vm14, %v1117_v63, %v1102_v62 }
 0x33b   : > { %v1121_v2 = vsel %vm1120_vm15, %v1119_v1, %v1106_v0 }
 0x33c   : > { %1123 = vst.msk [vmem:[%s1396_s30 + $0xa] sm:$0xff] %vm1122_vm0, %v1121_v2 }
 0x33d PF: > { %s18_s27 = sadd.s32 1, %s1272_s27  }
 0x33e   : > { %p15_p4 = scmp.ge.s32.totalorder %s18_s27, 4  }
 0x340   :  { %17 = sbr.rel (!%p15_p4) target bundleno = 1 (0x1), region = 95 }

</bundles_post_ra>
